<compile_context>
chip_gen: v7x
topology: tpu7x:2x2x1
jax: 0.10.0
libtpu: 0.0.40
codegen_flags: <defaults>
</compile_context>

<pallas_src>
import math

import jax
import jax.numpy as jnp
from jax.experimental import pallas as pl
from jax.experimental.pallas import tpu as pltpu

PATCH = 14


def _round_to_patch(x: int) -> int:
    # mirrors:  h = round(h / 14) * 14
    return max(PATCH, round(x / PATCH) * PATCH)


# ---------------------------------------------------------------------------
# Fused per-image kernel: patch-embed -> (+pos) -> attention block -> hard-VLAD
# ---------------------------------------------------------------------------

def _anyloc_fused_kernel(p_ref, wp_ref, posb_ref, wqkv_ref, wo_ref, c_ref, o_ref):
    d = wo_ref.shape[0]
    k_clusters = c_ref.shape[0]
    eps = 1e-12

    # ---- patch embedding: stride-14 conv expressed as (Np, Kp) @ (Kp, D) on MXU
    tok = jnp.dot(p_ref[0], wp_ref[...], preferred_element_type=jnp.float32)
    t = tok + posb_ref[...]                      # conv bias + positional embedding

    # ---- pre-LN single-head self-attention with residual (elementwise in f32)
    mu = jnp.mean(t, axis=-1, keepdims=True)
    var = jnp.mean((t - mu) ** 2, axis=-1, keepdims=True)
    x = ((t - mu) * jax.lax.rsqrt(var + 1e-6)).astype(jnp.bfloat16)

    qkv = jnp.dot(x, wqkv_ref[...], preferred_element_type=jnp.float32)  # (Np, 3D)
    q = qkv[:, :d].astype(jnp.bfloat16)
    k = qkv[:, d:2 * d].astype(jnp.bfloat16)
    v = qkv[:, 2 * d:].astype(jnp.bfloat16)

    # q @ k^T without a materialized transpose (NT contraction straight to MXU)
    s = jax.lax.dot_general(q, k, (((1,), (1,)), ((), ())),
                            preferred_element_type=jnp.float32)
    s = s * (1.0 / math.sqrt(d))
    s = s - jnp.max(s, axis=-1, keepdims=True)
    p = jnp.exp(s)
    p = p * pl.reciprocal(jnp.sum(p, axis=-1, keepdims=True), approx=True)

    av = jnp.dot(p.astype(jnp.bfloat16), v, preferred_element_type=jnp.float32)
    attn = jnp.dot(av.astype(jnp.bfloat16), wo_ref[...],
                   preferred_element_type=jnp.float32)
    f = attn + t                                  # (Np, D) f32, residual

    # ---- hard-assignment VLAD (intra-normalize per cluster + global L2), f32
    fn = f * jax.lax.rsqrt(jnp.sum(f * f, axis=-1, keepdims=True) + eps)
    c = c_ref[...]
    sim = jax.lax.dot_general(fn, c, (((1,), (1,)), ((), ())),
                              preferred_element_type=jnp.float32)        # (Np, K)

    # hard argmax (first max) built from max / iota / min -> one-hot assignment
    row_max = jnp.max(sim, axis=-1, keepdims=True)
    col = jax.lax.broadcasted_iota(jnp.int32, sim.shape, 1)
    idx = jnp.min(jnp.where(sim >= row_max, col, k_clusters),
                  axis=-1, keepdims=True)
    onehot = (col == idx).astype(jnp.float32)                            # (Np, K)

    counts = jnp.sum(onehot, axis=0)[:, None]                            # (K, 1)
    # tiny (Np,K) transpose kept explicit: the XLU slot is otherwise idle here
    agg = jnp.dot(onehot.T, fn, preferred_element_type=jnp.float32) - counts * c

    agg = agg * jax.lax.rsqrt(jnp.sum(agg * agg, axis=-1, keepdims=True) + eps)
    agg = agg * jax.lax.rsqrt(jnp.sum(agg * agg) + eps)                  # (K, D)

    # lane-dense flattened write: (K, D) -> (1, 1, K*D), K*D is a multiple of 128
    for kk in range(k_clusters):
        o_ref[0, :, kk * d:(kk + 1) * d] = agg[kk:kk + 1, :]


# ---------------------------------------------------------------------------
# Parameters + forward (glue in plain JAX, compute in the fused kernel)
# ---------------------------------------------------------------------------

def init_params(key, channels=3, dim=64, n_clusters=8, n_patches=16):
    kp, kb, kq, kk, kv, ko, kc, kpe = jax.random.split(key, 8)
    cpp = channels * PATCH * PATCH
    centers = jax.random.normal(kc, (n_clusters, dim), jnp.float32)
    centers = centers / jnp.linalg.norm(centers, axis=-1, keepdims=True)
    return {
        "w_patch": jax.random.normal(kp, (cpp, dim), jnp.float32) * 0.02,
        "b_patch": jax.random.normal(kb, (1, dim), jnp.float32) * 0.02,
        "pos_embed": jax.random.normal(kpe, (n_patches, dim), jnp.float32) * 0.02,
        "wq": jax.random.normal(kq, (dim, dim), jnp.float32) * 0.02,
        "wk": jax.random.normal(kk, (dim, dim), jnp.float32) * 0.02,
        "wv": jax.random.normal(kv, (dim, dim), jnp.float32) * 0.02,
        "wo": jax.random.normal(ko, (dim, dim), jnp.float32) * 0.02,
        "centers": centers,
    }


def anyloc_forward(params, images):
    b, c, h, w = images.shape
    hh, ww = _round_to_patch(h), _round_to_patch(w)
    # TODO(synk): torchvision's antialiased bilinear filter differs slightly from
    # jax.image.resize(antialias=True); semantics (bilinear + antialias) match.
    images = jax.image.resize(
        images, (b, c, hh, ww), method="bilinear", antialias=True
    ).astype(jnp.float32)

    gh, gw = hh // PATCH, ww // PATCH
    n_p = gh * gw
    d = params["w_patch"].shape[1]
    k_clusters = params["centers"].shape[0]
    cpp = c * PATCH * PATCH
    kp = ((cpp + 127) // 128) * 128          # 588 -> 640: explicit lane padding

    assert params["pos_embed"].shape[0] == n_p, "pos_embed size != patch count"

    # im2col patchify (stride-14, kernel-14 conv as a matmul)
    # TODO(synk): this XLA-side 6-D transpose materializes an image-sized HBM copy;
    # at real DINOv2 sizes the patch gather should be folded into the kernel's DMA
    # pattern (grid over (gh, gw) with a strided index_map).
    patches = images.reshape(b, c, gh, PATCH, gw, PATCH)
    patches = patches.transpose(0, 2, 4, 1, 3, 5).reshape(b, n_p, cpp)
    patches = jnp.pad(patches, ((0, 0), (0, 0), (0, kp - cpp))).astype(jnp.bfloat16)

    # bf16 MXU operands (f32 accumulation inside the kernel)
    w_patch = jnp.pad(params["w_patch"], ((0, kp - cpp), (0, 0))).astype(jnp.bfloat16)
    wqkv = jnp.concatenate([params["wq"], params["wk"], params["wv"]],
                           axis=1).astype(jnp.bfloat16)        # (D, 3D) stacked QKV
    wo = params["wo"].astype(jnp.bfloat16)
    posb = (params["pos_embed"] + params["b_patch"]).astype(jnp.float32)
    centers = params["centers"].astype(jnp.float32)

    vlad = pl.pallas_call(
        _anyloc_fused_kernel,
        out_shape=jax.ShapeDtypeStruct((b, 1, k_clusters * d), jnp.float32),
        grid=(b,),
        in_specs=[
            pl.BlockSpec((1, n_p, kp), lambda i: (i, 0, 0)),    # per-image patches
            pl.BlockSpec((kp, d), lambda i: (0, 0)),            # patch-embed weight
            pl.BlockSpec((n_p, d), lambda i: (0, 0)),           # bias + pos embed
            pl.BlockSpec((d, 3 * d), lambda i: (0, 0)),         # stacked Wq|Wk|Wv
            pl.BlockSpec((d, d), lambda i: (0, 0)),             # Wo
            pl.BlockSpec((k_clusters, d), lambda i: (0, 0)),    # VLAD centers
        ],
        out_specs=pl.BlockSpec((1, 1, k_clusters * d), lambda i: (i, 0, 0)),
        compiler_params=pltpu.CompilerParams(
            dimension_semantics=("parallel",),   # both v7x TCs; serial loop on 1-TC
            vmem_limit_bytes=32 * 1024 * 1024,
        ),
    )(patches, w_patch, posb, wqkv, wo, centers)

    return vlad.reshape(b, k_clusters * d)       # final global descriptor


if __name__ == "__main__":
    key = jax.random.PRNGKey(0)
    k_img, k_params = jax.random.split(key)

    B, C, H, W = 2, 3, 60, 60            # 60 -> rounds to 56 = 4*14 -> 4x4 = 16 patches
    images = jax.random.uniform(k_img, (B, C, H, W), jnp.float32)

    hh, ww = _round_to_patch(H), _round_to_patch(W)
    n_patches = (hh // PATCH) * (ww // PATCH)
    params = init_params(k_params, channels=C, dim=64, n_clusters=8,
                         n_patches=n_patches)

    fwd = jax.jit(anyloc_forward)
    desc = jax.block_until_ready(fwd(params, images))

    assert desc.shape == (B, 8 * 64), desc.shape
    assert bool(jnp.all(jnp.isfinite(desc)))
    # descriptor is globally L2-normalized (done in f32 inside the kernel)
    assert bool(jnp.allclose(jnp.linalg.norm(desc, axis=-1), 1.0, atol=1e-3))

    print("KERNEL_OK")
</pallas_src>

<mosaic_0001>
module attributes {stable_mosaic.version = 11 : i64} {
  func.func @_anyloc_fused_kernel(%arg0: i32, %arg1: memref<1x16x640xbf16, #tpu.memory_space<vmem>>, %arg2: memref<640x64xbf16, #tpu.memory_space<vmem>>, %arg3: memref<16x64xf32, #tpu.memory_space<vmem>>, %arg4: memref<64x192xbf16, #tpu.memory_space<vmem>>, %arg5: memref<64x64xbf16, #tpu.memory_space<vmem>>, %arg6: memref<8x64xf32, #tpu.memory_space<vmem>>, %arg7: memref<1x1x512xf32, #tpu.memory_space<vmem>>) attributes {dimension_semantics = [#tpu.dimension_semantics<parallel>], iteration_bounds = array<i64: 2>, scalar_prefetch = 0 : i64, scratch_operands = 0 : i64, tpu.core_type = #tpu.core_type<tc>, window_params = [{transform_indices = @transform_0, window_bounds = array<i64: 1, 16, 640>}, {pipeline_mode = #tpu.pipeline_mode<synchronous>, transform_indices = @transform_1, window_bounds = array<i64: 640, 64>}, {pipeline_mode = #tpu.pipeline_mode<synchronous>, transform_indices = @transform_2, window_bounds = array<i64: 16, 64>}, {pipeline_mode = #tpu.pipeline_mode<synchronous>, transform_indices = @transform_3, window_bounds = array<i64: 64, 192>}, {pipeline_mode = #tpu.pipeline_mode<synchronous>, transform_indices = @transform_4, window_bounds = array<i64: 64, 64>}, {pipeline_mode = #tpu.pipeline_mode<synchronous>, transform_indices = @transform_5, window_bounds = array<i64: 8, 64>}, {transform_indices = @transform_6, window_bounds = array<i64: 1, 1, 512>}]} {
    %c0 = arith.constant 0 : index
    %c0_0 = arith.constant 0 : index
    %c0_1 = arith.constant 0 : index
    %0 = vector.load %arg1[%c0, %c0_0, %c0_1] : memref<1x16x640xbf16, #tpu.memory_space<vmem>>, vector<1x16x640xbf16>
    %1 = vector.shape_cast %0 : vector<1x16x640xbf16> to vector<16x640xbf16>
    %c0_2 = arith.constant 0 : index
    %c0_3 = arith.constant 0 : index
    %2 = vector.load %arg2[%c0_2, %c0_3] : memref<640x64xbf16, #tpu.memory_space<vmem>>, vector<640x64xbf16>
    %cst = arith.constant dense<0.000000e+00> : vector<16x64xf32>
    %3 = tpu.matmul %1, %2, %cst {dimension_numbers = #tpu.dot_dimension_numbers<[1], [0], [0], [1], [0, 0, 1, 1], [], []>} : vector<16x640xbf16>, vector<640x64xbf16>, vector<16x64xf32> -> vector<16x64xf32>
    %c0_4 = arith.constant 0 : index
    %c0_5 = arith.constant 0 : index
    %4 = vector.load %arg3[%c0_4, %c0_5] : memref<16x64xf32, #tpu.memory_space<vmem>>, vector<16x64xf32>
    %5 = arith.addf %3, %4 : vector<16x64xf32>
    %cst_6 = arith.constant dense<0.000000e+00> : vector<16xf32>
    %6 = vector.multi_reduction <add>, %5, %cst_6 [1] : vector<16x64xf32> to vector<16xf32>
    %7 = vector.shape_cast %6 : vector<16xf32> to vector<16x1xf32>
    %cst_7 = arith.constant 6.400000e+01 : f32
    %8 = vector.broadcast %cst_7 : f32 to vector<16x1xf32>
    %9 = arith.divf %7, %8 : vector<16x1xf32>
    %10 = vector.broadcast %9 : vector<16x1xf32> to vector<16x64xf32>
    %11 = arith.subf %5, %10 : vector<16x64xf32>
    %12 = arith.mulf %11, %11 : vector<16x64xf32>
    %cst_8 = arith.constant dense<0.000000e+00> : vector<16xf32>
    %13 = vector.multi_reduction <add>, %12, %cst_8 [1] : vector<16x64xf32> to vector<16xf32>
    %14 = vector.shape_cast %13 : vector<16xf32> to vector<16x1xf32>
    %cst_9 = arith.constant 6.400000e+01 : f32
    %15 = vector.broadcast %cst_9 : f32 to vector<16x1xf32>
    %16 = arith.divf %14, %15 : vector<16x1xf32>
    %17 = vector.broadcast %9 : vector<16x1xf32> to vector<16x64xf32>
    %18 = arith.subf %5, %17 : vector<16x64xf32>
    %cst_10 = arith.constant 9.99999997E-7 : f32
    %19 = vector.broadcast %cst_10 : f32 to vector<16x1xf32>
    %20 = arith.addf %16, %19 : vector<16x1xf32>
    %21 = math.rsqrt %20 : vector<16x1xf32>
    %22 = vector.broadcast %21 : vector<16x1xf32> to vector<16x64xf32>
    %23 = arith.mulf %18, %22 : vector<16x64xf32>
    %24 = arith.truncf %23 : vector<16x64xf32> to vector<16x64xbf16>
    %c0_11 = arith.constant 0 : index
    %c0_12 = arith.constant 0 : index
    %25 = vector.load %arg4[%c0_11, %c0_12] : memref<64x192xbf16, #tpu.memory_space<vmem>>, vector<64x192xbf16>
    %cst_13 = arith.constant dense<0.000000e+00> : vector<16x192xf32>
    %26 = tpu.matmul %24, %25, %cst_13 {dimension_numbers = #tpu.dot_dimension_numbers<[1], [0], [0], [1], [0, 0, 1, 1], [], []>} : vector<16x64xbf16>, vector<64x192xbf16>, vector<16x192xf32> -> vector<16x192xf32>
    %27 = vector.extract_strided_slice %26 {offsets = [0, 0], sizes = [16, 64], strides = [1, 1]} : vector<16x192xf32> to vector<16x64xf32>
    %28 = arith.truncf %27 : vector<16x64xf32> to vector<16x64xbf16>
    %29 = vector.extract_strided_slice %26 {offsets = [0, 64], sizes = [16, 64], strides = [1, 1]} : vector<16x192xf32> to vector<16x64xf32>
    %30 = arith.truncf %29 : vector<16x64xf32> to vector<16x64xbf16>
    %31 = vector.extract_strided_slice %26 {offsets = [0, 128], sizes = [16, 64], strides = [1, 1]} : vector<16x192xf32> to vector<16x64xf32>
    %32 = arith.truncf %31 : vector<16x64xf32> to vector<16x64xbf16>
    %cst_14 = arith.constant dense<0.000000e+00> : vector<16x16xf32>
    %33 = tpu.matmul %28, %30, %cst_14 {dimension_numbers = #tpu.dot_dimension_numbers<[1], [1], [0], [0], [0, 0, 1, 0], [], []>} : vector<16x64xbf16>, vector<16x64xbf16>, vector<16x16xf32> -> vector<16x16xf32>
    %cst_15 = arith.constant 1.250000e-01 : f32
    %34 = vector.broadcast %cst_15 : f32 to vector<16x16xf32>
    %35 = arith.mulf %33, %34 : vector<16x16xf32>
    %cst_16 = arith.constant dense<0xFF800000> : vector<16xf32>
    %36 = vector.multi_reduction <maximumf>, %35, %cst_16 [1] : vector<16x16xf32> to vector<16xf32>
    %37 = vector.shape_cast %36 : vector<16xf32> to vector<16x1xf32>
    %38 = vector.broadcast %37 : vector<16x1xf32> to vector<16x16xf32>
    %39 = arith.subf %35, %38 : vector<16x16xf32>
    %40 = math.exp %39 : vector<16x16xf32>
    %cst_17 = arith.constant dense<0.000000e+00> : vector<16xf32>
    %41 = vector.multi_reduction <add>, %40, %cst_17 [1] : vector<16x16xf32> to vector<16xf32>
    %42 = vector.shape_cast %41 : vector<16xf32> to vector<16x1xf32>
    %43 = tpu.reciprocal %42 {approx = true} : vector<16x1xf32> -> vector<16x1xf32>
    %44 = vector.broadcast %43 : vector<16x1xf32> to vector<16x16xf32>
    %45 = arith.mulf %40, %44 : vector<16x16xf32>
    %46 = arith.truncf %45 : vector<16x16xf32> to vector<16x16xbf16>
    %cst_18 = arith.constant dense<0.000000e+00> : vector<16x64xf32>
    %47 = tpu.matmul %46, %32, %cst_18 {dimension_numbers = #tpu.dot_dimension_numbers<[1], [0], [0], [1], [0, 0, 1, 1], [], []>} : vector<16x16xbf16>, vector<16x64xbf16>, vector<16x64xf32> -> vector<16x64xf32>
    %48 = arith.truncf %47 : vector<16x64xf32> to vector<16x64xbf16>
    %c0_19 = arith.constant 0 : index
    %c0_20 = arith.constant 0 : index
    %49 = vector.load %arg5[%c0_19, %c0_20] : memref<64x64xbf16, #tpu.memory_space<vmem>>, vector<64x64xbf16>
    %cst_21 = arith.constant dense<0.000000e+00> : vector<16x64xf32>
    %50 = tpu.matmul %48, %49, %cst_21 {dimension_numbers = #tpu.dot_dimension_numbers<[1], [0], [0], [1], [0, 0, 1, 1], [], []>} : vector<16x64xbf16>, vector<64x64xbf16>, vector<16x64xf32> -> vector<16x64xf32>
    %51 = arith.addf %50, %5 : vector<16x64xf32>
    %52 = arith.mulf %51, %51 : vector<16x64xf32>
    %cst_22 = arith.constant dense<0.000000e+00> : vector<16xf32>
    %53 = vector.multi_reduction <add>, %52, %cst_22 [1] : vector<16x64xf32> to vector<16xf32>
    %54 = vector.shape_cast %53 : vector<16xf32> to vector<16x1xf32>
    %cst_23 = arith.constant 9.99999996E-13 : f32
    %55 = vector.broadcast %cst_23 : f32 to vector<16x1xf32>
    %56 = arith.addf %54, %55 : vector<16x1xf32>
    %57 = math.rsqrt %56 : vector<16x1xf32>
    %58 = vector.broadcast %57 : vector<16x1xf32> to vector<16x64xf32>
    %59 = arith.mulf %51, %58 : vector<16x64xf32>
    %c0_24 = arith.constant 0 : index
    %c0_25 = arith.constant 0 : index
    %60 = vector.load %arg6[%c0_24, %c0_25] : memref<8x64xf32, #tpu.memory_space<vmem>>, vector<8x64xf32>
    %cst_26 = arith.constant dense<0.000000e+00> : vector<16x8xf32>
    %61 = tpu.matmul %59, %60, %cst_26 {dimension_numbers = #tpu.dot_dimension_numbers<[1], [1], [0], [0], [0, 0, 1, 0], [], []>} : vector<16x64xf32>, vector<8x64xf32>, vector<16x8xf32> -> vector<16x8xf32>
    %cst_27 = arith.constant dense<0xFF800000> : vector<16xf32>
    %62 = vector.multi_reduction <maximumf>, %61, %cst_27 [1] : vector<16x8xf32> to vector<16xf32>
    %63 = vector.shape_cast %62 : vector<16xf32> to vector<16x1xf32>
    %64 = tpu.iota {dimensions = array<i32: 1>} : vector<16x8xi32>
    %65 = vector.broadcast %63 : vector<16x1xf32> to vector<16x8xf32>
    %66 = arith.cmpf oge, %61, %65 : vector<16x8xf32>
    %c8_i32 = arith.constant 8 : i32
    %67 = vector.broadcast %c8_i32 : i32 to vector<16x8xi32>
    %68 = arith.select %66, %64, %67 : vector<16x8xi1>, vector<16x8xi32>
    %cst_28 = arith.constant dense<2147483647> : vector<16xi32>
    %69 = vector.multi_reduction <minsi>, %68, %cst_28 [1] : vector<16x8xi32> to vector<16xi32>
    %70 = vector.shape_cast %69 : vector<16xi32> to vector<16x1xi32>
    %71 = vector.broadcast %70 : vector<16x1xi32> to vector<16x8xi32>
    %72 = arith.cmpi eq, %64, %71 : vector<16x8xi32>
    %73 = arith.extui %72 : vector<16x8xi1> to vector<16x8xi32>
    %74 = arith.sitofp %73 : vector<16x8xi32> to vector<16x8xf32>
    %cst_29 = arith.constant dense<0.000000e+00> : vector<8xf32>
    %75 = vector.multi_reduction <add>, %74, %cst_29 [0] : vector<16x8xf32> to vector<8xf32>
    %76 = vector.shape_cast %75 : vector<8xf32> to vector<8x1xf32>
    %77 = tpu.transpose %74, [1, 0] : vector<16x8xf32> -> vector<8x16xf32>
    %cst_30 = arith.constant dense<0.000000e+00> : vector<8x64xf32>
    %78 = tpu.matmul %77, %59, %cst_30 {dimension_numbers = #tpu.dot_dimension_numbers<[1], [0], [0], [1], [0, 0, 1, 1], [], []>} : vector<8x16xf32>, vector<16x64xf32>, vector<8x64xf32> -> vector<8x64xf32>
    %79 = vector.broadcast %76 : vector<8x1xf32> to vector<8x64xf32>
    %80 = arith.mulf %79, %60 : vector<8x64xf32>
    %81 = arith.subf %78, %80 : vector<8x64xf32>
    %82 = arith.mulf %81, %81 : vector<8x64xf32>
    %cst_31 = arith.constant dense<0.000000e+00> : vector<8xf32>
    %83 = vector.multi_reduction <add>, %82, %cst_31 [1] : vector<8x64xf32> to vector<8xf32>
    %84 = vector.shape_cast %83 : vector<8xf32> to vector<8x1xf32>
    %cst_32 = arith.constant 9.99999996E-13 : f32
    %85 = vector.broadcast %cst_32 : f32 to vector<8x1xf32>
    %86 = arith.addf %84, %85 : vector<8x1xf32>
    %87 = math.rsqrt %86 : vector<8x1xf32>
    %88 = vector.broadcast %87 : vector<8x1xf32> to vector<8x64xf32>
    %89 = arith.mulf %81, %88 : vector<8x64xf32>
    %90 = arith.mulf %89, %89 : vector<8x64xf32>
    %91 = vector.shape_cast %90 : vector<8x64xf32> to vector<1x8x64xf32>
    %cst_33 = arith.constant dense<0.000000e+00> : vector<1xf32>
    %92 = vector.multi_reduction <add>, %91, %cst_33 [1, 2] : vector<1x8x64xf32> to vector<1xf32>
    %93 = vector.shape_cast %92 : vector<1xf32> to vector<1x1x1xf32>
    %94 = vector.extract %93[0, 0, 0] : f32 from vector<1x1x1xf32>
    %cst_34 = arith.constant 9.99999996E-13 : f32
    %95 = arith.addf %94, %cst_34 : f32
    %96 = math.rsqrt %95 : f32
    %97 = vector.broadcast %96 : f32 to vector<8x64xf32>
    %98 = arith.mulf %89, %97 : vector<8x64xf32>
    %99 = vector.extract_strided_slice %98 {offsets = [0, 0], sizes = [1, 64], strides = [1, 1]} : vector<8x64xf32> to vector<1x64xf32>
    %c0_35 = arith.constant 0 : index
    %c0_36 = arith.constant 0 : index
    %c0_37 = arith.constant 0 : index
    %100 = vector.load %arg7[%c0_35, %c0_36, %c0_37] : memref<1x1x512xf32, #tpu.memory_space<vmem>>, vector<1x1x64xf32>
    %101 = vector.shape_cast %100 : vector<1x1x64xf32> to vector<1x64xf32>
    %102 = vector.shape_cast %99 : vector<1x64xf32> to vector<1x1x64xf32>
    tpu.vector_store %arg7[%c0_35, %c0_36, %c0_37], %102 {strides = array<i32>} : memref<1x1x512xf32, #tpu.memory_space<vmem>>, vector<1x1x64xf32>,
    %103 = vector.extract_strided_slice %98 {offsets = [1, 0], sizes = [1, 64], strides = [1, 1]} : vector<8x64xf32> to vector<1x64xf32>
    %c0_38 = arith.constant 0 : index
    %c0_39 = arith.constant 0 : index
    %c64 = arith.constant 64 : index
    %104 = vector.load %arg7[%c0_38, %c0_39, %c64] : memref<1x1x512xf32, #tpu.memory_space<vmem>>, vector<1x1x64xf32>
    %105 = vector.shape_cast %104 : vector<1x1x64xf32> to vector<1x64xf32>
    %106 = vector.shape_cast %103 : vector<1x64xf32> to vector<1x1x64xf32>
    tpu.vector_store %arg7[%c0_38, %c0_39, %c64], %106 {strides = array<i32>} : memref<1x1x512xf32, #tpu.memory_space<vmem>>, vector<1x1x64xf32>,
    %107 = vector.extract_strided_slice %98 {offsets = [2, 0], sizes = [1, 64], strides = [1, 1]} : vector<8x64xf32> to vector<1x64xf32>
    %c0_40 = arith.constant 0 : index
    %c0_41 = arith.constant 0 : index
    %c128 = arith.constant 128 : index
    %108 = vector.load %arg7[%c0_40, %c0_41, %c128] : memref<1x1x512xf32, #tpu.memory_space<vmem>>, vector<1x1x64xf32>
    %109 = vector.shape_cast %108 : vector<1x1x64xf32> to vector<1x64xf32>
    %110 = vector.shape_cast %107 : vector<1x64xf32> to vector<1x1x64xf32>
    tpu.vector_store %arg7[%c0_40, %c0_41, %c128], %110 {strides = array<i32>} : memref<1x1x512xf32, #tpu.memory_space<vmem>>, vector<1x1x64xf32>,
    %111 = vector.extract_strided_slice %98 {offsets = [3, 0], sizes = [1, 64], strides = [1, 1]} : vector<8x64xf32> to vector<1x64xf32>
    %c0_42 = arith.constant 0 : index
    %c0_43 = arith.constant 0 : index
    %c192 = arith.constant 192 : index
    %112 = vector.load %arg7[%c0_42, %c0_43, %c192] : memref<1x1x512xf32, #tpu.memory_space<vmem>>, vector<1x1x64xf32>
    %113 = vector.shape_cast %112 : vector<1x1x64xf32> to vector<1x64xf32>
    %114 = vector.shape_cast %111 : vector<1x64xf32> to vector<1x1x64xf32>
    tpu.vector_store %arg7[%c0_42, %c0_43, %c192], %114 {strides = array<i32>} : memref<1x1x512xf32, #tpu.memory_space<vmem>>, vector<1x1x64xf32>,
    %115 = vector.extract_strided_slice %98 {offsets = [4, 0], sizes = [1, 64], strides = [1, 1]} : vector<8x64xf32> to vector<1x64xf32>
    %c0_44 = arith.constant 0 : index
    %c0_45 = arith.constant 0 : index
    %c256 = arith.constant 256 : index
    %116 = vector.load %arg7[%c0_44, %c0_45, %c256] : memref<1x1x512xf32, #tpu.memory_space<vmem>>, vector<1x1x64xf32>
    %117 = vector.shape_cast %116 : vector<1x1x64xf32> to vector<1x64xf32>
    %118 = vector.shape_cast %115 : vector<1x64xf32> to vector<1x1x64xf32>
    tpu.vector_store %arg7[%c0_44, %c0_45, %c256], %118 {strides = array<i32>} : memref<1x1x512xf32, #tpu.memory_space<vmem>>, vector<1x1x64xf32>,
    %119 = vector.extract_strided_slice %98 {offsets = [5, 0], sizes = [1, 64], strides = [1, 1]} : vector<8x64xf32> to vector<1x64xf32>
    %c0_46 = arith.constant 0 : index
    %c0_47 = arith.constant 0 : index
    %c320 = arith.constant 320 : index
    %120 = vector.load %arg7[%c0_46, %c0_47, %c320] : memref<1x1x512xf32, #tpu.memory_space<vmem>>, vector<1x1x64xf32>
    %121 = vector.shape_cast %120 : vector<1x1x64xf32> to vector<1x64xf32>
    %122 = vector.shape_cast %119 : vector<1x64xf32> to vector<1x1x64xf32>
    tpu.vector_store %arg7[%c0_46, %c0_47, %c320], %122 {strides = array<i32>} : memref<1x1x512xf32, #tpu.memory_space<vmem>>, vector<1x1x64xf32>,
    %123 = vector.extract_strided_slice %98 {offsets = [6, 0], sizes = [1, 64], strides = [1, 1]} : vector<8x64xf32> to vector<1x64xf32>
    %c0_48 = arith.constant 0 : index
    %c0_49 = arith.constant 0 : index
    %c384 = arith.constant 384 : index
    %124 = vector.load %arg7[%c0_48, %c0_49, %c384] : memref<1x1x512xf32, #tpu.memory_space<vmem>>, vector<1x1x64xf32>
    %125 = vector.shape_cast %124 : vector<1x1x64xf32> to vector<1x64xf32>
    %126 = vector.shape_cast %123 : vector<1x64xf32> to vector<1x1x64xf32>
    tpu.vector_store %arg7[%c0_48, %c0_49, %c384], %126 {strides = array<i32>} : memref<1x1x512xf32, #tpu.memory_space<vmem>>, vector<1x1x64xf32>,
    %127 = vector.extract_strided_slice %98 {offsets = [7, 0], sizes = [1, 64], strides = [1, 1]} : vector<8x64xf32> to vector<1x64xf32>
    %c0_50 = arith.constant 0 : index
    %c0_51 = arith.constant 0 : index
    %c448 = arith.constant 448 : index
    %128 = vector.load %arg7[%c0_50, %c0_51, %c448] : memref<1x1x512xf32, #tpu.memory_space<vmem>>, vector<1x1x64xf32>
    %129 = vector.shape_cast %128 : vector<1x1x64xf32> to vector<1x64xf32>
    %130 = vector.shape_cast %127 : vector<1x64xf32> to vector<1x1x64xf32>
    tpu.vector_store %arg7[%c0_50, %c0_51, %c448], %130 {strides = array<i32>} : memref<1x1x512xf32, #tpu.memory_space<vmem>>, vector<1x1x64xf32>,
    return
  }
  func.func @transform_0(%arg0: i32) -> (i32, i32, i32) {
    %c0_i32 = arith.constant 0 : i32
    %c0_i32_0 = arith.constant 0 : i32
    %c0_i32_1 = arith.constant 0 : i32
    return %arg0, %c0_i32, %c0_i32_0 : i32, i32, i32
  }
  func.func @transform_1(%arg0: i32) -> (i32, i32) {
    %c0_i32 = arith.constant 0 : i32
    %c0_i32_0 = arith.constant 0 : i32
    %c0_i32_1 = arith.constant 0 : i32
    return %c0_i32, %c0_i32_0 : i32, i32
  }
  func.func @transform_2(%arg0: i32) -> (i32, i32) {
    %c0_i32 = arith.constant 0 : i32
    %c0_i32_0 = arith.constant 0 : i32
    %c0_i32_1 = arith.constant 0 : i32
    return %c0_i32, %c0_i32_0 : i32, i32
  }
  func.func @transform_3(%arg0: i32) -> (i32, i32) {
    %c0_i32 = arith.constant 0 : i32
    %c0_i32_0 = arith.constant 0 : i32
    %c0_i32_1 = arith.constant 0 : i32
    return %c0_i32, %c0_i32_0 : i32, i32
  }
  func.func @transform_4(%arg0: i32) -> (i32, i32) {
    %c0_i32 = arith.constant 0 : i32
    %c0_i32_0 = arith.constant 0 : i32
    %c0_i32_1 = arith.constant 0 : i32
    return %c0_i32, %c0_i32_0 : i32, i32
  }
  func.func @transform_5(%arg0: i32) -> (i32, i32) {
    %c0_i32 = arith.constant 0 : i32
    %c0_i32_0 = arith.constant 0 : i32
    %c0_i32_1 = arith.constant 0 : i32
    return %c0_i32, %c0_i32_0 : i32, i32
  }
  func.func @transform_6(%arg0: i32) -> (i32, i32, i32) {
    %c0_i32 = arith.constant 0 : i32
    %c0_i32_0 = arith.constant 0 : i32
    %c0_i32_1 = arith.constant 0 : i32
    return %arg0, %c0_i32, %c0_i32_0 : i32, i32, i32
  }
}

</mosaic_0001>

<bundles_post_ra>
// kernel: anyloc_forward.1
= control target key start
LH: loop header
LB: loop body
LE: loop exit
PB: predicated region body
PF: predicated region fallthrough
CT: control target
= control target key end

     0   :  { %s1828_s21 = smov 0   ;;  %s2114_s0 = inlined_call_operand.vmem [shape: bf16[2,16,640], index: 0, kind: input, shape index: {}]   ;;  %s2115_s1 = inlined_call_operand.vmem [shape: bf16[640,64], index: 1, kind: input, shape index: {}]   ;;  %s2116_s2 = inlined_call_operand.vmem [shape: f32[16,64], index: 2, kind: input, shape index: {}]   ;;  %s2117_s3 = inlined_call_operand.vmem [shape: bf16[64,192], index: 3, kind: input, shape index: {}]   ;;  %s2118_s4 = inlined_call_operand.vmem [shape: bf16[64,64], index: 4, kind: input, shape index: {}]   ;;  %s2119_s5 = inlined_call_operand.vmem [shape: f32[8,64], index: 5, kind: input, shape index: {}]   ;;  %s2120_s6 = inlined_call_operand.vmem [shape: f32[2,1,512], index: 6, kind: output, shape index: {}]  }
   0x1 LB: > { %s1474_s22 = sadd.s32 4294967295, %s1785_s21   ;;  %p1478_p0 = scmp.ge.s32.totalorder %s1785_s21, 1  ;;  %s1785_s21 = sphi %s1828_s21, %s16_s21  }
   0x2   : > { %p212_p1 = scmp.lt.s32.totalorder %s1785_s21, 3 }
   0x4   : > { %p213_p2 = pnand %p1478_p0, %p212_p1 }
   0x5   : > { %v1696_v0 = vld [vmem:[%s2115_s1 + $0x40] sm:$0xff] (!%p213_p2)   ;;  %v1700_v4 = vld [vmem:[%s2115_s1 + $0x48] sm:$0xff] (!%p213_p2)   ;;  %v1704_v8 = vld [vmem:[%s2115_s1 + $0x50] sm:$0xff] (!%p213_p2)   ;;  %p241_p3 = scmp.lt.s32.totalorder (!%p213_p2), %s1474_s22, 1  ;;  %v1787_v33 = vmov (!%p213_p2), 0.0   ;;  %vm1788_vm0 = vmmov (!%p213_p2), 0  }
   0x6   : > { %216 = sbr.rel (%p213_p2) target bundleno = 3632 (0xe30), region = 44  ;;  %v1697_v1 = vld [vmem:[%s2115_s1] sm:$0xff] (!%p213_p2)   ;;  %1550 = vmatprep.subr.bf16.mxu0 (!%p213_p2), %v1696_v0  ;;  %v1701_v5 = vld [vmem:[%s2115_s1 + $0x8] sm:$0xff] (!%p213_p2)   ;;  %v1705_v9 = vld [vmem:[%s2115_s1 + $0x10] sm:$0xff] (!%p213_p2)   ;;  %vm728_vm1 = vcmask (!%p213_p2), 523264   ;;  %s1790_s15 = smov (!%p213_p2), 64  }
   0x7   : > { %v1698_v2 = vld [vmem:[%s2115_s1 + $0xc0] sm:$0xff] (!%p213_p2)   ;;  %1551 = vmatpush3.bf16.msra.mxu0 (!%p213_p2), %v1697_v1  ;;  %v1702_v6 = vld [vmem:[%s2115_s1 + $0xc8] sm:$0xff] (!%p213_p2)   ;;  %v1706_v10 = vld [vmem:[%s2115_s1 + $0xd0] sm:$0xff] (!%p213_p2)   ;;  %vm905_vm2 = vcmask (!%p213_p2), 130048   ;;  %vm1149_vm3 = vcmask (!%p213_p2), 64512  }
   0x8   : > { %v1699_v3 = vld [vmem:[%s2115_s1 + $0x80] sm:$0xff] (!%p213_p2)   ;;  %1572 = vmatprep.subr.bf16.mxu1 (!%p213_p2), %v1698_v2  ;;  %1552 = vmatprep.subr.bf16.mxu0 (!%p213_p2), %v1700_v4  ;;  %v1703_v7 = vld [vmem:[%s2115_s1 + $0x88] sm:$0xff] (!%p213_p2)   ;;  %v1707_v11 = vld [vmem:[%s2115_s1 + $0x90] sm:$0xff] (!%p213_p2)  }
   0x9   : > { %1573 = vmatpush3.bf16.msra.mxu1 (!%p213_p2), %v1699_v3  ;;  %v1708_v12 = vld [vmem:[%s2115_s1 + $0x58] sm:$0xff] (!%p213_p2)   ;;  %v1712_v16 = vld [vmem:[%s2115_s1 + $0x60] sm:$0xff] (!%p213_p2)   ;;  %v1716_v20 = vld [vmem:[%s2115_s1 + $0x68] sm:$0xff] (!%p213_p2)  }
   0xa   : > { %1574 = vmatprep.subr.bf16.mxu1 (!%p213_p2), %v1702_v6  ;;  %v1709_v13 = vld [vmem:[%s2115_s1 + $0x18] sm:$0xff] (!%p213_p2)   ;;  %v1713_v17 = vld [vmem:[%s2115_s1 + $0x20] sm:$0xff] (!%p213_p2)   ;;  %v1717_v21 = vld [vmem:[%s2115_s1 + $0x28] sm:$0xff] (!%p213_p2)  }
   0xb   : > { %1553 = vmatpush3.bf16.msra.mxu0 (!%p213_p2), %v1701_v5  ;;  %v1710_v14 = vld [vmem:[%s2115_s1 + $0xd8] sm:$0xff] (!%p213_p2)   ;;  %v1714_v18 = vld [vmem:[%s2115_s1 + $0xe0] sm:$0xff] (!%p213_p2)   ;;  %v1718_v22 = vld [vmem:[%s2115_s1 + $0xe8] sm:$0xff] (!%p213_p2)  }
   0xc   : > { %1554 = vmatprep.subr.bf16.mxu0 (!%p213_p2), %v1704_v8  ;;  %v1711_v15 = vld [vmem:[%s2115_s1 + $0x98] sm:$0xff] (!%p213_p2)   ;;  %v1715_v19 = vld [vmem:[%s2115_s1 + $0xa0] sm:$0xff] (!%p213_p2)   ;;  %v1719_v23 = vld [vmem:[%s2115_s1 + $0xa8] sm:$0xff] (!%p213_p2)  }
   0xd   : > { %1575 = vmatpush3.bf16.msra.mxu1 %v1703_v7  ;;  %s2122_s22 = smov (!%p241_p3, %s1474_s22), 1  ;;  %v1720_v24 = vld [vmem:[%s2115_s1 + $0x70] sm:$0xff]   ;;  %v1724_v28 = vld [vmem:[%s2115_s1 + $0x78] sm:$0xff]   ;;  %v1734_v37 = vld [vmem:[%s2115_s1 + $0x100] sm:$0xff]  }
   0xe   : > { %1576 = vmatprep.subr.bf16.mxu1 %v1706_v10  ;;  %s1677_s29 = smul.u32 40, %s2122_s22  ;;  %v1721_v25 = vld [vmem:[%s2115_s1 + $0x30] sm:$0xff]   ;;  %v1725_v29 = vld [vmem:[%s2115_s1 + $0x38] sm:$0xff]   ;;  %v1735_v38 = vld [vmem:[%s2115_s1 + $0x108] sm:$0xff]   ;;  %s1480_s30 = sshll.u32 %s2122_s22, 2 }
   0xf   : > { %1555 = vmatpush3.bf16.msra.mxu0 %v1705_v9  ;;  %v1722_v26 = vld [vmem:[%s2115_s1 + $0xf0] sm:$0xff]   ;;  %v1726_v30 = vld [vmem:[%s2115_s1 + $0xf8] sm:$0xff]   ;;  %v1738_v41 = vld [vmem:[%s2115_s1 + $0x120] sm:$0xff]   ;;  %s2094_s10 = scalar_lea.vmem %s2120_s6, %s1480_s30 }
  0x10   : > { %1556 = vmatprep.subr.bf16.mxu0 %v1708_v12  ;;  %v1723_v27 = vld [vmem:[%s2115_s1 + $0xb0] sm:$0xff]   ;;  %s1933_s16 = scalar_lea.vmem %s2114_s0, %s1677_s29  ;;  %v1730_v34 = vld [vmem:[%s2115_s1 + $0xb8] sm:$0xff]   ;;  %v1739_v42 = vld [vmem:[%s2115_s1 + $0x128] sm:$0xff]  }
  0x11   : > { %1577 = vmatpush3.bf16.msra.mxu1 %v1707_v11  ;;  %v1727_v31 = vld [vmem:[%s1933_s16] ss:$20 sps:$4 sm:$0xff]   ;;  %v1729_v32 = vld [vmem:[%s1933_s16 + $0x4] ss:$20 sps:$4 sm:$0xff]   ;;  %v1731_v35 = vld [vmem:[%s1933_s16 + $0x8] ss:$20 sps:$4 sm:$0xff]  }
  0x12   : > { %1578 = vmatprep.subr.bf16.mxu1 %v1710_v14  ;;  %637 = vmatprep.mubr.bf16.mxu0 %v1729_v32  ;;  %v1733_v36 = vld [vmem:[%s1933_s16 + $0xc] ss:$20 sps:$4 sm:$0xff]   ;;  %v1736_v39 = vld [vmem:[%s2115_s1 + $0x110] sm:$0xff]   ;;  %v1737_v40 = vld [vmem:[%s2115_s1 + $0x118] sm:$0xff]  }
  0x13   : > { %1557 = vmatpush3.bf16.msra.mxu0 %v1709_v13  ;;  %678 = vmatprep.mubr.bf16.mxu1 %v1733_v36  ;;  %v1740_v43 = vld [vmem:[%s2115_s1 + $0x130] sm:$0xff]   ;;  %v1741_v44 = vld [vmem:[%s2115_s1 + $0x138] sm:$0xff]   ;;  %v337_v47 = vld [vmem:[%s2116_s2] sm:$0xff] }
  0x14   : > { %1558 = vmatprep.subr.bf16.mxu0 %v1712_v16  ;;  %v1742_v45 = vld [vmem:[%s1933_s16 + $0x10] ss:$20 sps:$4 sm:$0xff]   ;;  %v338_v52 = vld [vmem:[%s2116_s2 + $0x8] sm:$0xff] }
  0x15   : > { %1579 = vmatpush3.bf16.msra.mxu1 %v1711_v15 }
  0x16   : > { %1580 = vmatprep.subr.bf16.mxu1 %v1714_v18  ;;  %v1745_v18 = vld [vmem:[%s2117_s3 + $0x4] ss:$8 sps:$4 sm:$0xff]  }
  0x17   : > { %1559 = vmatpush3.bf16.msra.mxu0 %v1713_v17 }
  0x18   : > { %1560 = vmatprep.subr.bf16.mxu0 %v1716_v20  ;;  %v1748_v20 = vld [vmem:[%s2117_s3 + $0x14] ss:$8 sps:$4 sm:$0xff]  }
  0x19   : > { %1581 = vmatpush3.bf16.msra.mxu1 %v1715_v19  ;;  %v1743_v19 = vld [vmem:[%s2117_s3] ss:$8 sps:$4 sm:$0xff]  }
  0x1a   : > { %1582 = vmatprep.subr.bf16.mxu1 %v1718_v22  ;;  %v1751_v22 = vld [vmem:[%s2117_s3 + $0x24] ss:$8 sps:$4 sm:$0xff]  }
  0x1b   : > { %1561 = vmatpush3.bf16.msra.mxu0 %v1717_v21  ;;  %v1746_v21 = vld [vmem:[%s2117_s3 + $0x10] ss:$8 sps:$4 sm:$0xff]  }
  0x1c   : > { %1562 = vmatprep.subr.bf16.mxu0 %v1720_v24  ;;  %v1754_v24 = vld [vmem:[%s2117_s3 + $0x34] ss:$8 sps:$4 sm:$0xff]  }
  0x1d   : > { %1583 = vmatpush3.bf16.msra.mxu1 %v1719_v23  ;;  %v1749_v23 = vld [vmem:[%s2117_s3 + $0x20] ss:$8 sps:$4 sm:$0xff]  }
  0x1e   : > { %1584 = vmatprep.subr.bf16.mxu1 %v1722_v26  ;;  %v1789_v26 = vmov 0  }
  0x1f   : > { %1563 = vmatpush3.bf16.msra.mxu0 %v1721_v25  ;;  %v1752_v25 = vld [vmem:[%s2117_s3 + $0x30] ss:$8 sps:$4 sm:$0xff]  }
  0x20   : > { %1564 = vmatprep.subr.bf16.mxu0 %v1724_v28 }
  0x21   : > { %1585 = vmatpush3.bf16.msra.mxu1 %v1723_v27 }
  0x22   : > { %1586 = vmatprep.subr.bf16.mxu1 %v1726_v30 }
  0x23   : > { %1565 = vmatpush3.bf16.msra.mxu0 %v1725_v29 }
  0x24   : > { %1618 = vmatprep.subr.bf16.mxu0 %v1787_v33 }
  0x25   : > { %1587 = vmatpush3.bf16.msra.mxu1 %v1730_v34 }
  0x26   : > { %638 = vmatmul.mubr.bf16.vlgmr.msra.gmra.mrb[0].mxu0 %v1727_v31  ;;  %808 = vmatprep.subr.bf16.mxu1 %v1745_v18 }
  0x27   : > { %1634 = vmatprep.mubr.msk.bf16.mxu0 %vm1788_vm0, %v1787_v33  ;;  %1619 = vmatpush3.bf16.msra.mxu0 %v1734_v37 }
  0x28   : > { %679 = vmatmul.mubr.bf16.vlgmr.msra.gmra.mrb[0].mxu1 %v1731_v35  ;;  %1620 = vmatprep.subr.bf16.mxu0 %v1787_v33 }
  0x29   : > { %809 = vmatpush1.bf16.msra.mxu1 %v1743_v19  ;;  %840 = vmatprep.mubr.bf16.mxu1 %v1789_v26 }
  0x2a   : > { %810 = vmatprep.subr.bf16.mxu1 %v1748_v20 }
  0x2b   : > { %1621 = vmatpush3.bf16.msra.mxu0 %v1735_v38 }
  0x2c   : > { %1622 = vmatprep.subr.bf16.mxu0 %v1787_v33 }
  0x2d   : > { %811 = vmatpush1.bf16.msra.mxu1 %v1746_v21 }
  0x2e   : > { %812 = vmatprep.subr.bf16.mxu1 %v1751_v22 }
  0x2f   : > { %1623 = vmatpush3.bf16.msra.mxu0 %v1736_v39 }
  0x30   : > { %1624 = vmatprep.subr.bf16.mxu0 %v1787_v33 }
  0x31   : > { %813 = vmatpush1.bf16.msra.mxu1 %v1749_v23 }
  0x32   : > { %814 = vmatprep.subr.bf16.mxu1 %v1754_v24 }
  0x33   : > { %1625 = vmatpush3.bf16.msra.mxu0 %v1737_v40 }
  0x34   : > { %1626 = vmatprep.subr.bf16.mxu0 %v1787_v33 }
  0x35   : > { %815 = vmatpush1.bf16.msra.mxu1 %v1752_v25 }
  0x36   : > { %1638 = vmatprep.subr.bf16.mxu1 %v1787_v33 }
  0x37   : > { %1627 = vmatpush3.bf16.msra.mxu0 %v1738_v41 }
  0x38   : > { %1628 = vmatprep.subr.bf16.mxu0 %v1787_v33 }
  0x3b   : > { %1629 = vmatpush3.bf16.msra.mxu0 %v1739_v42 }
  0x3c   : > { %1630 = vmatprep.subr.bf16.mxu0 %v1787_v33 }
  0x3f   : > { %1631 = vmatpush3.bf16.msra.mxu0 %v1740_v43 }
  0x40   : > { %1632 = vmatprep.subr.bf16.mxu0 %v1787_v33 }
  0x43   : > { %1633 = vmatpush3.bf16.msra.mxu0 %v1741_v44 }
  0x44   : > { %1650 = vmatprep.subr.bf16.mxu0 %v1787_v33 }
  0x46   : > { %1635 = vmatmul.mubr.bf16.vlgmr.msra.gmra.mrb[4].mxu0 %v1742_v45 }
  0x47   : > { %1658 = vmatprep.mubr.msk.bf16.mxu0 %vm1788_vm0, %v1787_v33 }
  0xf9   : > { %v1566_v46 = vpop.f32.mrb[0].mxu0 }
  0xfa   : > { %v1567_v48 = vpop.f32.mrb[1].mxu0 }
  0xfb   : > { %v1568_v49 = vadd.f32 %v1567_v48, %v1566_v46  ;;  %v1569_v50 = vpop.f32.mrb[2].mxu0  ;;  %v1588_v51 = vpop.f32.mrb[0].mxu1 }
  0xfc   : > { %v1570_v53 = vpop.f32.mrb[3].mxu0  ;;  %v1589_v56 = vpop.f32.mrb[1].mxu1 }
  0xfd   : > { %v640_v54 = vadd.f32 %v1568_v49, %v337_v47  ;;  %v1571_v55 = vadd.f32 %v1570_v53, %v1569_v50  ;;  %v1590_v57 = vadd.f32 %v1589_v56, %v1588_v51  ;;  %v1591_v58 = vpop.f32.mrb[2].mxu1 }
  0xfe   : > { %v1592_v60 = vpop.f32.mrb[3].mxu1 }
  0xff   : > { %v643_v59 = vadd.f32 %v1571_v55, %v338_v52  ;;  %v1593_v61 = vadd.f32 %v1592_v60, %v1591_v58  ;;  %v681_v62 = vadd.f32 %v1590_v57, %v640_v54 }
 0x101   : > { %v684_v63 = vadd.f32 %v1593_v61, %v643_v59 }
 0x119   : > { %v721_v0 = vpop.f32.mrb[4].mxu0 }
 0x11a   : > { %v1992_v1 = vadd.f32 %v721_v0, %v681_v62  ;;  %v1636_v2 = vpop.f32.mrb[5].mxu0 }
 0x11b   : > { %v724_v3 = vpop.f32.mrb[6].mxu0  ;;  %v1755_v2 = vld [vmem:[%s2118_s4] sm:$0xff]  }
 0x11c   : > { %v1994_v4 = vadd.f32 %v724_v3, %v684_v63  ;;  %v1637_v5 = vpop.f32.mrb[7].mxu0  ;;  %v729_v6 = vsel %vm728_vm1, %v1992_v1, 0.0  ;;  %1651 = vmatpush3.bf16.msra.mxu0 %v1755_v2  ;;  %v1756_v3 = vld [vmem:[%s2118_s4 + $0x8] sm:$0xff]  }
 0x11d   : > { %730 = vadd.xlane.f32.xlu0 %v729_v6  ;;  %1652 = vmatprep.subr.bf16.mxu0 %v1787_v33  ;;  %v1757_v5 = vld [vmem:[%s2118_s4 + $0x10] sm:$0xff]  }
 0x11e   : > { %v732_v7 = vsel %vm728_vm1, %v1994_v4, 0.0 }
 0x120   : > { %1653 = vmatpush3.bf16.msra.mxu0 %v1756_v3 }
 0x121   : > { %733 = vadd.xlane.f32.xlu0 %v732_v7  ;;  %1654 = vmatprep.subr.bf16.mxu0 %v1787_v33 }
 0x124   : > { %1655 = vmatpush3.bf16.msra.mxu0 %v1757_v5 }
 0x125   : > { %1656 = vmatprep.subr.bf16.mxu0 %v1787_v33 }
 0x1aa   : > { %v731_v8 = vpop.xlane.xlu0 %730 }
 0x1ab   : > { %v736_v9 = vmul.f32 0.015625, %v731_v8 }
 0x1ad   : > { %v738_v10 = vsub.f32 %v1992_v1, %v736_v9 }
 0x1ae   : > { %v734_v11 = vpop.xlane.xlu0 %733 }
 0x1af   : > { %v737_v12 = vmul.f32 0.015625, %v734_v11  ;;  %v740_v13 = vmul.f32 %v738_v10, %v738_v10 }
 0x1b1   : > { %v739_v14 = vsub.f32 %v1994_v4, %v737_v12  ;;  %v742_v15 = vsel %vm728_vm1, %v740_v13, 0.0  ;;  %v1758_v13 = vld [vmem:[%s2118_s4 + $0x18] sm:$0xff]  }
 0x1b2   : > { %743 = vadd.xlane.f32.xlu1 %v742_v15  ;;  %1657 = vmatpush3.bf16.msra.mxu0 %v1758_v13 }
 0x1b3   : > { %v741_v16 = vmul.f32 %v739_v14, %v739_v14 }
 0x1b5   : > { %v745_v17 = vsel %vm728_vm1, %v741_v16, 0.0 }
 0x1b6   : > { %746 = vadd.xlane.f32.xlu1 %v745_v17 }
 0x23f   : > { %v744_v27 = vpop.xlane.xlu1 %743 }
 0x240   : > { %v748_v28 = vmul.f32 0.015625, %v744_v27 }
 0x242   : > { %v750_v29 = vadd.f32 1e-06, %v748_v28 }
 0x243   : > { %v747_v30 = vpop.xlane.xlu1 %746 }
 0x244   : > { %v749_v31 = vmul.f32 0.015625, %v747_v30  ;;  %1759 = vrsqrt.f32 %v750_v29  ;;  %v2066_v29 = vld [vmem:[%s2119_s5] sm:$0xff] }
 0x246   : > { %v751_v32 = vadd.f32 1e-06, %v749_v31 }
 0x248   : > { %1761 = vrsqrt.f32 %v751_v32 }
 0x24e   : > { %v1760_v34 = vpop.eup %1759 }
 0x24f   : > { %v754_v36 = vmul.f32 %v1760_v34, %v738_v10 }
 0x252   : > { %v1762_v35 = vpop.eup %1761 }
 0x253   : > { %v755_v37 = vmul.f32 %v1762_v35, %v739_v14 }
 0x255   : > { %v756_v38 = vpack.c.bf16 %v755_v37, %v754_v36 }
 0x257   : > { %1534 = vmatmul.mubr.msk.bf16.vlgmr.msra.gmra.mrb[4].mxu1 %vm728_vm1, %v756_v38 }
 0x258   : > { %1640 = vmatprep.mubr.msk.bf16.mxu1 %vm1788_vm0, %v1787_v33 }
 0x32a   : > { %v842_v39 = vpop.f32.mrb[4].mxu1 }
 0x32b   : > { %v844_v40 = vpop.f32.mrb[5].mxu1 }
 0x32c   : > { %v846_v41 = vpop.f32.mrb[6].mxu1 }
 0x32d   : > { %v851_v42 = vpack.c.bf16 %v846_v41, %v842_v39  ;;  %v848_v43 = vpop.f32.mrb[7].mxu1 }
 0x32e   : > { %v852_v44 = vpack.c.bf16 %v848_v43, %v844_v40  ;;  %v1156_v43 = vlaneseq }
 0x32f   : > { %854 = vrot.lane.b32.xlu0 %v851_v42, %s1790_s15 }
 0x330   : > { %vm1343_vm10 = vcmp.lt.s32.totalorder %v1156_v43, 64  ;;  %vm1372_vm11 = vcmp.ge.s32.totalorder %v1156_v43, 64  ;;  %vm1373_vm12 = vcmp.lt.s32.totalorder %v1156_v43, 128 }
 0x331   : > { %vm1374_vm13 = vmand %vm1372_vm11, %vm1373_vm12 }
 0x3a1   : > { %v855_v45 = vpop.permute.xlu0 %854 }
 0x3a2   : > { %v860_v46 = vsel %vm728_vm1, %v855_v45, 0 }
 0x3a3   : > { %1639 = vmatpush3.bf16.xpose.msra.mxu1 %v860_v46 }
 0x3a4   : > { %1644 = vmatprep.subr.bf16.mxu1 %v1787_v33 }
 0x3aa   : > { %1641 = vmatmul.mubr.msk.bf16.vlgmr.msra.gmra.mrb[8].mxu1 %vm728_vm1, %v851_v42 }
 0x3ab   : > { %1645 = vmatpush3.bf16.msra.mxu1 %v852_v44  ;;  %1646 = vmatprep.mubr.msk.bf16.mxu1 %vm1788_vm0, %v1787_v33  ;;  %v1157_v44 = vand.u32 127, %v1156_v43 }
 0x3ac   : > { %1662 = vmatprep.subr.msk.mxu1 %vm728_vm1, %v2066_v29 }
 0x47d   : > { %v896_v47 = vpop.f32.mrb[8].mxu1 }
 0x47e   : > { %v903_v48 = vmul.f32 0.125, %v896_v47  ;;  %v1642_v49 = vpop.f32.mrb[9].mxu1 }
 0x47f   : > { %v899_v50 = vpop.f32.mrb[10].mxu1 }
 0x480   : > { %v904_v51 = vmul.f32 0.125, %v899_v50  ;;  %v1643_v52 = vpop.f32.mrb[11].mxu1  ;;  %v906_v53 = vsel %vm905_vm2, %v903_v48, -inf }
 0x481   : > { %907 = vmax.xlane.f32.xlu1 %v906_v53 }
 0x482   : > { %v909_v54 = vsel %vm905_vm2, %v904_v51, -inf }
 0x485   : > { %910 = vmax.xlane.f32.xlu1 %v909_v54 }
 0x50e   : > { %v908_v55 = vpop.xlane.xlu1 %907 }
 0x50f   : > { %v912_v56 = vsub.f32 %v903_v48, %v908_v55 }
 0x511   : > { %v914_v57 = vmul.f32 1.442695, %v912_v56 }
 0x512   : > { %v911_v58 = vpop.xlane.xlu1 %910 }
 0x513   : > { %1763 = vpow2.f32 %v914_v57  ;;  %v913_v59 = vsub.f32 %v904_v51, %v911_v58 }
 0x515   : > { %v916_v60 = vmul.f32 1.442695, %v913_v59 }
 0x517   : > { %1765 = vpow2.f32 %v916_v60 }
 0x51d   : > { %v1764_v61 = vpop.eup %1763 }
 0x51e   : > { %v918_v62 = vsel %vm905_vm2, %v1764_v61, 0.0 }
 0x51f   : > { %919 = vadd.xlane.f32.xlu1 %v918_v62 }
 0x521   : > { %v1766_v63 = vpop.eup %1765 }
 0x522   : > { %v921_v0 = vsel %vm905_vm2, %v1766_v63, 0.0 }
 0x523   : > { %922 = vadd.xlane.f32.xlu1 %v921_v0 }
 0x5ac   : > { %v920_v6 = vpop.xlane.xlu1 %919 }
 0x5ad   : > { %1767 = vrcp.f32 %v920_v6 }
 0x5b0   : > { %v923_v7 = vpop.xlane.xlu1 %922 }
 0x5b1   : > { %1769 = vrcp.f32 %v923_v7 }
 0x5b7   : > { %v1768_v8 = vpop.eup %1767 }
 0x5b8   : > { %v926_v10 = vmul.f32 %v1768_v8, %v1764_v61 }
 0x5bb   : > { %v1770_v9 = vpop.eup %1769 }
 0x5bc   : > { %v927_v11 = vmul.f32 %v1770_v9, %v1766_v63 }
 0x5be   : > { %v928_v12 = vpack.c.bf16 %v927_v11, %v926_v10 }
 0x5c0   : > { %1647 = vmatmul.mubr.msk.bf16.vlgmr.msra.gmra.mrb[12].mxu1 %vm905_vm2, %v928_v12 }
 0x5c1   : > { %1663 = vmatpush3.xpose.msk.msra.mxu1 %vm728_vm1, %v2066_v29 }
 0x693   : > { %v966_v14 = vpop.f32.mrb[12].mxu1 }
 0x694   : > { %v1648_v15 = vpop.f32.mrb[13].mxu1 }
 0x695   : > { %v969_v16 = vpop.f32.mrb[14].mxu1 }
 0x696   : > { %v973_v17 = vpack.c.bf16 %v969_v16, %v966_v14  ;;  %v1649_v18 = vpop.f32.mrb[15].mxu1 }
 0x698   : > { %1659 = vmatmul.mubr.msk.bf16.vlgmr.msra.gmra.mrb[8].mxu0 %vm728_vm1, %v973_v17 }
 0x76b   : > { %v1043_v19 = vpop.f32.mrb[8].mxu0 }
 0x76c   : > { %v1044_v20 = vadd.f32 %v1043_v19, %v1992_v1  ;;  %v1660_v21 = vpop.f32.mrb[9].mxu0  ;;  %v1791_v1 = vmov 0.0|0.0  }
 0x76d   : > { %v1046_v22 = vpop.f32.mrb[10].mxu0  ;;  %1674 = vmatprep.subr.bf16.mxu1 %v1791_v1 }
 0x76e   : > { %v1047_v23 = vadd.f32 %v1046_v22, %v1994_v4  ;;  %v1661_v24 = vpop.f32.mrb[11].mxu0  ;;  %v1050_v25 = vmul.f32 %v1044_v20, %v1044_v20 }
 0x770   : > { %v1052_v26 = vsel %vm728_vm1, %v1050_v25, 0.0  ;;  %v1051_v27 = vmul.f32 %v1047_v23, %v1047_v23 }
 0x771   : > { %1053 = vadd.xlane.f32.xlu1 %v1052_v26 }
 0x772   : > { %v1055_v28 = vsel %vm728_vm1, %v1051_v27, 0.0 }
 0x775   : > { %1056 = vadd.xlane.f32.xlu1 %v1055_v28 }
 0x7fe   : > { %v1054_v4 = vpop.xlane.xlu1 %1053 }
 0x7ff   : > { %v1058_v30 = vadd.f32 1e-12, %v1054_v4 }
 0x801   : > { %1771 = vrsqrt.f32 %v1058_v30 }
 0x802   : > { %v1057_v31 = vpop.xlane.xlu1 %1056 }
 0x803   : > { %v1059_v32 = vadd.f32 1e-12, %v1057_v31 }
 0x805   : > { %1773 = vrsqrt.f32 %v1059_v32 }
 0x80b   : > { %v1772_v34 = vpop.eup %1771 }
 0x80c   : > { %v1062_v35 = vmul.f32 %v1772_v34, %v1044_v20 }
 0x80e   : > { %1664 = vmatprep.mubr.msk.f32.mxu1 %vm728_vm1, %v1062_v35 }
 0x80f   : > { %v1774_v36 = vpop.eup %1773 }
 0x810   : > { %v1063_v37 = vmul.f32 %v1774_v36, %v1047_v23 }
 0x812   : > { %1665 = vmatmul.mubr.msk.f32.vlgmr.msra.gmra.mrb[16].mxu1 %vm728_vm1, %v1063_v37  ;;  %v1675_v38 = vpack.c.bf16 %v1063_v37, %v1062_v35 }
 0x813   : > { %1671 = vmatprep.mubr.msk.f32.mxu1 %vm1788_vm0, %v1787_v33 }
 0x814   : > { %1676 = vmatpush3.bf16.msra.mxu1 %v1675_v38 }
 0x8e5   : > { %v1666_v39 = vpop.f32.mrb[16].mxu1 }
 0x8e6   : > { %v1140_v40 = vpop.f32.mrb[17].mxu1  ;;  %v1153_v41 = vsel %vm1149_vm3, %v1666_v39, -inf }
 0x8e7   : > { %1154 = vmax.xlane.f32.xlu1 %v1153_v41  ;;  %v1150_v42 = vsel %vm1149_vm3, %v1140_v40, -inf }
 0x8e8   : > { %1151 = vmax.xlane.f32.xlu0 %v1150_v42 }
 0x974   : > { %v1155_v45 = vpop.xlane.xlu1 %1154 }
 0x975   : > { %vm1159_vm4 = vcmp.ge.f32.partialorder %v1666_v39, %v1155_v45  ;;  %v1152_v46 = vpop.xlane.xlu0 %1151 }
 0x976   : > { %v1161_v47 = vsel %vm1159_vm4, %v1157_v44, 8  ;;  %vm1158_vm5 = vcmp.ge.f32.partialorder %v1140_v40, %v1152_v46 }
 0x977   : > { %v1160_v48 = vsel %vm1158_vm5, %v1157_v44, 8  ;;  %v1177_v49 = vsel %vm1149_vm3, %v1161_v47, 2147483647  ;;  %v1351_v47 = vshrl.u32 %v1156_v43, 7 }
 0x978   : > { %v1162_v50 = vsel %vm1149_vm3, %v1160_v48, 2147483647  ;;  %v1179_v53 = vshra.s32 %v1177_v49, 16  ;;  %v1178_v58 = vand.u32 65535, %v1177_v49 }
 0x979   : > { %v1164_v51 = vshra.s32 %v1162_v50, 16  ;;  %v1163_v55 = vand.u32 65535, %v1162_v50 }
 0x97a   : > { %v1181_v54 = vcvt.s32.f32 %v1179_v53  ;;  %v1180_v61 = vcvt.s32.f32 %v1178_v58 }
 0x97b   : > { %v1166_v52 = vcvt.s32.f32 %v1164_v51  ;;  %v1165_v57 = vcvt.s32.f32 %v1163_v55 }
 0x97d   : > { %1167 = vmin.xlane.f32.xlu1 %v1166_v52 }
 0x981   : > { %1182 = vmin.xlane.f32.xlu1 %v1181_v54 }
 0xa0a   : > { %v1168_v56 = vpop.xlane.xlu1 %1167 }
 0xa0b   : > { %vm1169_vm6 = vcmp.eq.f32.partialorder %v1166_v52, %v1168_v56  ;;  %v1174_v63 = vcvt.f32.s32 %v1168_v56 }
 0xa0c   : > { %v1170_v59 = vsel %vm1169_vm6, %v1165_v57, inf }
 0xa0d   : > { %1171 = vmin.xlane.f32.xlu1 %v1170_v59  ;;  %v1175_v2 = vshll.u32 %v1174_v63, 16 }
 0xa0e   : > { %v1183_v60 = vpop.xlane.xlu1 %1182 }
 0xa0f   : > { %vm1184_vm7 = vcmp.eq.f32.partialorder %v1181_v54, %v1183_v60  ;;  %v1189_v3 = vcvt.f32.s32 %v1183_v60 }
 0xa10   : > { %v1185_v62 = vsel %vm1184_vm7, %v1180_v61, inf }
 0xa11   : > { %1186 = vmin.xlane.f32.xlu1 %v1185_v62  ;;  %v1190_v8 = vshll.u32 %v1189_v3, 16 }
 0xa9a   : > { %v1172_v0 = vpop.xlane.xlu1 %1171 }
 0xa9b   : > { %v1173_v5 = vcvt.f32.s32 %v1172_v0 }
 0xa9d   : > { %v1176_v6 = vadd.s32 %v1175_v2, %v1173_v5 }
 0xa9e   : > { %v1187_v7 = vpop.xlane.xlu1 %1186 }
 0xa9f   : > { %v1188_v9 = vcvt.f32.s32 %v1187_v7  ;;  %vm1192_vm8 = vcmp.eq.s32.totalorder %v1157_v44, %v1176_v6 }
 0xaa0   : > { %v1545_v10 = vsel %vm1192_vm8, 1.0, %v1787_v33 }
 0xaa1   : > { %v1191_v11 = vadd.s32 %v1190_v8, %v1188_v9  ;;  %1210 = vxpose.xlu1.b32.start [1/2] (short) (narrow) %v1545_v10, 8  ;;  %v1198_v13 = vsel %vm1149_vm3, %v1545_v10, 0.0 }
 0xaa3   : > { %vm1193_vm9 = vcmp.eq.s32.totalorder %v1157_v44, %v1191_v11  ;;  %v1792_v44 = vmov 1966171168  }
 0xaa4   : > { %v1546_v12 = vsel %vm1193_vm9, 1.0, %v1787_v33  ;;  %v1348_v45 = vunpack.c.l.s4 %v1792_v44 }
 0xaa5   : > { %1211 = vxpose.xlu1.b32.end [2/2] (short) (narrow) %v1546_v12, 8  ;;  %v1199_v14 = vsel %vm1149_vm3, %v1546_v12, 0.0 }
 0xaa6   : > { %v1200_v15 = vadd.f32 %v1199_v14, %v1198_v13  ;;  %v1349_v46 = vunpack.c.0.s8 %v1348_v45 }
 0xaa8   : > { %v1201_v16 = vrot.slane %v1200_v15, 4  ;;  %v1352_v48 = vsub.s32 %v1349_v46, %v1351_v47 }
 0xaaa   : > { %v1202_v17 = vadd.f32 %v1201_v16, %v1200_v15 }
 0xaac   : > { %v1203_v18 = vrot.slane %v1202_v17, 2 }
 0xaae   : > { %v1204_v19 = vadd.f32 %v1203_v18, %v1202_v17 }
 0xab0   : > { %v1205_v20 = vrot.slane %v1204_v19, 1 }
 0xab2   : > { %v1206_v21 = vadd.f32 %v1205_v20, %v1204_v19 }
 0xab4   : > { %1208 = vbcast.lane.b32.xlu0 %v1206_v21, 256 }
 0xb21   : > { %v1226_v22 = vpop.trf.xlu1 }
 0xb22   : > { %1672 = vmatmul.mubr.msk.f32.vlgmr.msra.gmra.mrb[18].mxu1 %vm905_vm2, %v1226_v22 }
 0xb26   : > { %v1209_v23 = vpop.permute.xlu0 %1208 }
 0xb27   : > { %v1315_v24 = vmul.f32 %v1209_v23, %v2066_v29 }
 0xbf5   : > { %v1311_v33 = vpop.f32.mrb[18].mxu1 }
 0xbf6   : > { %v1316_v25 = vsub.f32 %v1311_v33, %v1315_v24  ;;  %v1673_v26 = vpop.f32.mrb[19].mxu1 }
 0xbf8   : > { %v1317_v27 = vmul.f32 %v1316_v25, %v1316_v25 }
 0xbfa   : > { %v1318_v28 = vsel %vm728_vm1, %v1317_v27, 0.0 }
 0xbfb   : > { %1319 = vadd.xlane.f32.xlu0 %v1318_v28 }
 0xc88   : > { %v1320_v1 = vpop.xlane.xlu0 %1319 }
 0xc89   : > { %v1321_v4 = vadd.f32 1e-12, %v1320_v1 }
 0xc8b   : > { %1775 = vrsqrt.f32 %v1321_v4 }
 0xc95   : > { %v1776_v30 = vpop.eup %1775 }
 0xc96   : > { %v1323_v31 = vmul.f32 %v1776_v30, %v1316_v25 }
 0xc98   : > { %v1324_v32 = vmul.f32 %v1323_v31, %v1323_v31 }
 0xc9a   : > { %v1325_v34 = vsel %vm728_vm1, %v1324_v32, 0.0 }
 0xc9b   : > { %1326 = vadd.xlane.f32.xlu1 %v1325_v34 }
 0xd28   : > { %v1327_v35 = vpop.xlane.xlu1 %1326 }
 0xd29   : > { %v1328_v36 = vrot.slane %v1327_v35, 4 }
 0xd2b   : > { %v1329_v37 = vadd.f32 %v1328_v36, %v1327_v35 }
 0xd2d   : > { %v1330_v29 = vrot.slane %v1329_v37, 2 }
 0xd2f   : > { %v1331_v38 = vadd.f32 %v1330_v29, %v1329_v37 }
 0xd31   : > { %v1332_v39 = vrot.slane %v1331_v38, 1 }
 0xd33   : > { %v1333_v40 = vadd.f32 %v1332_v39, %v1331_v38 }
 0xd35   : > { %1678 = vpush %v1333_v40 }
 0xd66   : > { %s1679_s28 = spop %1678 }
 0xd67   : > { %s1335_s29 = sadd.f32 1e-12, %s1679_s28 }
 0xd69   : > { %v1336_v41 = vstv %s1335_s29 }
 0xd6a   : > { %1777 = vrsqrt.f32 %v1336_v41 }
 0xd74   : > { %v1778_v42 = vpop.eup %1777 }
 0xd75   : > { %1680 = vpush %v1778_v42 }
 0xda6   : > { %s1681_s7 = spop %1680 }
 0xda7   : > { %v1339_v49 = vstv %s1681_s7 }
 0xda8   : > { %v1340_v50 = vmul.f32 %v1339_v49, %v1323_v31 }
 0xdaa   : > { %1345 = vst.msk [vmem:[%s2094_s10] sm:$0x1] %vm1343_vm10, %v1340_v50  ;;  %v1353_v51 = vrot.slane %v1340_v50, %v1352_v48  ;;  %v1384_v52 = vcombine.high %v1340_v50, %v1340_v50 }
 0xdac   : > { %v1361_v53 = vrot.slane %v1353_v51, %v1352_v48  ;;  %v1391_v54 = vrot.slane %v1384_v52, %v1352_v48  ;;  %v1354_v55 = vcombine.high %v1353_v51, %v1353_v51 }
 0xdae   : > { %v1376_v56 = vcombine.high %v1361_v53, %v1361_v53  ;;  %v1398_v57 = vrot.slane %v1391_v54, %v1352_v48  ;;  %v1368_v58 = vrot.slane %v1354_v55, %v1352_v48  ;;  %v1401_v61 = vcombine.high %v1391_v54, %v1391_v54 }
 0xdb0   : > { %v1413_v59 = vcombine.high %v1398_v57, %v1398_v57  ;;  %1378 = vst.msk [vmem:[%s2094_s10 + $0x1] sm:$0x1] %vm1343_vm10, %v1376_v56  ;;  %1400 = vst.msk [vmem:[%s2094_s10 + $0x2] sm:$0x1] %vm1343_vm10, %v1398_v57  ;;  %1369 = vrot.lane.b32.xlu0 %v1368_v58, %s1790_s15  ;;  %v1379_v60 = vcombine.high %v1368_v58, %v1368_v58  ;;  %v1408_v62 = vrot.slane %v1401_v61, %v1352_v48 }
 0xdb2   : > { %1415 = vst.msk [vmem:[%s2094_s10 + $0x3] sm:$0x1] %vm1343_vm10, %v1413_v59  ;;  %v1416_v63 = vcombine.high %v1408_v62, %v1408_v62 }
 0xdb4   : > { %1380 = vrot.lane.b32.xlu0 %v1379_v60, %s1790_s15 }
 0xdb8   : > { %1409 = vrot.lane.b32.xlu0 %v1408_v62, %s1790_s15 }
 0xdbc   : > { %1417 = vrot.lane.b32.xlu0 %v1416_v63, %s1790_s15 }
 0xe22   : > { %v1370_v0 = vpop.permute.xlu0 %1369 }
 0xe23   : > { %1375 = vst.msk [vmem:[%s2094_s10] sm:$0x1] %vm1374_vm13, %v1370_v0 }
 0xe26   : > { %v1381_v2 = vpop.permute.xlu0 %1380 }
 0xe27   : > { %1383 = vst.msk [vmem:[%s2094_s10 + $0x1] sm:$0x1] %vm1374_vm13, %v1381_v2 }
 0xe2a   : > { %v1410_v3 = vpop.permute.xlu0 %1409 }
 0xe2b   : > { %1412 = vst.msk [vmem:[%s2094_s10 + $0x2] sm:$0x1] %vm1374_vm13, %v1410_v3 }
 0xe2e   : > { %v1418_v5 = vpop.permute.xlu0 %1417 }
 0xe2f   : > { %1420 = vst.msk [vmem:[%s2094_s10 + $0x3] sm:$0x1] %vm1374_vm13, %v1418_v5 }
 0xe30 PF: > { %s16_s21 = sadd.s32 1, %s1785_s21  }
 0xe31   : > { %p13_p4 = scmp.ge.s32.totalorder %s16_s21, 4  }
 0xe33   :  { %15 = sbr.rel (!%p13_p4) target bundleno = 1 (0x1), region = 74 }

</bundles_post_ra>
